<compile_context>
chip_gen: v5e
topology: v5e:2x2
jax: 0.10.0
libtpu: 0.0.40
codegen_flags: <defaults>
</compile_context>

<pallas_src>
import numpy as np
import jax
import jax.numpy as jnp
from jax.experimental import pallas as pl
from jax.experimental.pallas import tpu as pltpu

# ---- static config (mirrors cfg in RNN.__init__) ----
NUM_NODES = 7          # forced by np.tile(input_time, 7) + concat along features
FEATURE_DIM = 2        # value + 1 time feature
OUTPUT_DIM = 1
INPUT_WINDOW = 8       # lookback
OUTPUT_WINDOW = 3      # horizon
HIDDEN = 32
BATCH = 2
INPUT_SIZE = NUM_NODES * FEATURE_DIM
N_OUT = NUM_NODES * OUTPUT_DIM
N_EXTRA = NUM_NODES * (FEATURE_DIM - OUTPUT_DIM)
# TODO(synk): teacher-forcing branch (self.training and random.random() < ratio) is a
# training-time stochastic path; only the eval/autoregressive path is implemented.


def rnn_forecast_kernel(pstack_ref, extra_ref, whh_ref, wfbs_ref, wfc_ref, bfc_ref,
                        out_ref):
    """Whole autoregressive forecast in one kernel invocation.

    pstack_ref: (T, Hz*B, H)  horizon-stacked input projections x @ W_ih^T + (b_ih+b_hh),
                              horizon i's rows left-padded with zero projections so all
                              Hz prefix chains share one T-step recurrence
    extra_ref : (Hz-1, B, H)  target-time-feature projection + biases + b_fc @ W_fb
    whh_ref   : (H, H)        W_hh^T
    wfbs_ref  : (H, H)        fused feedback weight  W_fc^T @ (P_out @ W_ih^T)
    wfc_ref   : (H, N*O)      fc.weight^T
    bfc_ref   : (1, N*O)      fc.bias
    out_ref   : (Hz*B, N*O)
    """
    T, HB, H = pstack_ref.shape
    n_fb = extra_ref.shape[0]            # Hz - 1 serial feedback links
    B = HB // (n_fb + 1)

    # Hoist every loop-invariant load above the serial chain.
    whh = whh_ref[...]
    wfbs = wfbs_ref[...]
    wfc = wfc_ref[...]
    bfc = bfc_ref[...]
    extras = [extra_ref[j] for j in range(n_fb)]
    window = [pstack_ref[t] for t in range(T)]
    row_id = jax.lax.broadcasted_iota(jnp.int32, (HB, H), 0)

    # Phase 1: ONE shared T-step recurrence over all horizon prefixes at once.
    # h0 == 0 for every row, and zero-padded rows stay exactly 0 (tanh(0@Whh + 0) == 0),
    # so the first W_hh matmul is skipped.
    h = jnp.tanh(window[0])
    for t in range(1, T):
        h = jnp.tanh(jnp.dot(h, whh, preferred_element_type=jnp.float32) + window[t])

    # Phase 2: serial data-dependent feedback tail (Hz-1 links).
    # The feedback projection is computed straight from the hidden state via the fused
    # fc->W_ih weight (fc output itself is not on the chain).  Closed horizons are
    # frozen with a select so the epilogue reads every final state from one array.
    for j in range(n_fb):
        hj = h[j * B:(j + 1) * B]                                    # horizon j final state
        fbproj = jnp.dot(hj, wfbs, preferred_element_type=jnp.float32) + extras[j]
        fb_full = jnp.tile(fbproj, (n_fb + 1, 1))                    # broadcast to all rows
        h_next = jnp.tanh(jnp.dot(h, whh, preferred_element_type=jnp.float32) + fb_full)
        h = jnp.where(row_id >= (j + 1) * B, h_next, h)              # keep closed horizons

    # Epilogue (off the serial chain): one fc matmul + a single store for all horizons.
    out_ref[...] = jnp.dot(h, wfc, preferred_element_type=jnp.float32) + bfc


def _preprocess(inp, target, inp_time, tgt_time):
    """JAX equivalent of the numpy glue in forward()."""
    B, T, _ = inp.shape
    it = jnp.tile(inp_time[:, :, 0:1], (1, 1, NUM_NODES))[..., None]     # (B,T,N,1)
    src = jnp.concatenate([inp[..., None], it], axis=-1)                 # (B,T,N,F)
    src = jnp.transpose(src, (1, 0, 2, 3)).astype(jnp.float32)           # (T,B,N,F)
    src = src.reshape(T, B, INPUT_SIZE)

    tt = jnp.tile(tgt_time[:, :, 0:1], (1, 1, NUM_NODES))[..., None]
    tgt = jnp.concatenate([target[..., None], tt], axis=-1)
    tgt = jnp.transpose(tgt, (1, 0, 2, 3)).astype(jnp.float32)           # (Hz,B,N,F)
    return src, tgt


def _selection_matrices():
    p_out = np.zeros((N_OUT, INPUT_SIZE), np.float32)
    p_extra = np.zeros((N_EXTRA, INPUT_SIZE), np.float32)
    for n in range(NUM_NODES):
        for o in range(OUTPUT_DIM):
            p_out[n * OUTPUT_DIM + o, n * FEATURE_DIM + o] = 1.0
        for e in range(FEATURE_DIM - OUTPUT_DIM):
            p_extra[n * (FEATURE_DIM - OUTPUT_DIM) + e,
                    n * FEATURE_DIM + OUTPUT_DIM + e] = 1.0
    return jnp.asarray(p_out), jnp.asarray(p_extra)


def rnn_forward(inp, target, inp_time, tgt_time, params):
    wih, whh, bih, bhh, wfc, bfc = params
    B, T, _ = inp.shape
    Hz = target.shape[1]

    src, tgt = _preprocess(inp, target, inp_time, tgt_time)              # (T,B,I)
    extra = tgt[:, :, :, OUTPUT_DIM:].reshape(Hz, B, N_EXTRA)            # (Hz,B,7)

    wih_t = jnp.transpose(wih)                       # (I, H)
    whh_t = jnp.transpose(whh)                       # (H, H)
    brnn = (bih + bhh).reshape(1, HIDDEN)            # (1, H)
    wfc_t = jnp.transpose(wfc)                       # (H, N*O)
    bfc2 = bfc.reshape(1, N_OUT)

    # Fold the 0/1 interleave matrices into W_ih, and fuse fc->feedback (all at trace time).
    p_out, p_extra = _selection_matrices()
    wfb_out = p_out @ wih_t                          # (N*O, H)
    wfb_extra = p_extra @ wih_t                      # (N_EXTRA, H)
    wfb_step = wfc_t @ wfb_out                       # (H, H) fused feedback step weight

    # Precompute every input projection off the serial recurrent chain.
    proj = (src.reshape(T * B, INPUT_SIZE) @ wih_t).reshape(T, B, HIDDEN) + brnn

    # Horizon-stacked, left-zero-padded projections: pstack[t, i*B:(i+1)*B] is
    # proj[t] if t >= i else 0  (so horizon i's prefix over x_i..x_{T-1} shares the
    # same T-step recurrence; h stays exactly 0 through the padded steps).
    mask = (jnp.arange(T)[:, None] >= jnp.arange(Hz)[None, :]).astype(jnp.float32)  # (T,Hz)
    pstack = (proj[:, None, :, :] * mask[:, :, None, None]).reshape(T, Hz * B, HIDDEN)

    # Constant part of each feedback projection (time feats + rnn biases + fc bias term).
    extra_part = (extra.reshape(Hz * B, N_EXTRA) @ wfb_extra).reshape(Hz, B, HIDDEN) + brnn
    extra2 = (extra_part + bfc2 @ wfb_out)[:Hz - 1]                      # (Hz-1, B, H)

    out_flat = pl.pallas_call(
        rnn_forecast_kernel,
        out_shape=jax.ShapeDtypeStruct((Hz * B, N_OUT), jnp.float32),
        in_specs=[pl.BlockSpec(memory_space=pltpu.MemorySpace.VMEM)] * 6,
        out_specs=pl.BlockSpec(memory_space=pltpu.MemorySpace.VMEM),
    )(pstack, extra2, whh_t, wfb_step, wfc_t, bfc2)

    out = out_flat.reshape(Hz, B, NUM_NODES, OUTPUT_DIM)
    out = jnp.transpose(out, (1, 0, 2, 3))           # (B, Hz, N, O)
    # Squeeze only the trailing output_dim axis (robust when B==1 or Hz==1;
    # identical to torch.squeeze at these shapes).
    return out[..., 0] if OUTPUT_DIM == 1 else out


def rnn_forward_ref(inp, target, inp_time, tgt_time, params):
    """Pure-JAX reference (mirrors the PyTorch eval-mode forward)."""
    wih, whh, bih, bhh, wfc, bfc = params
    B, T, _ = inp.shape
    Hz = target.shape[1]
    src, tgt = _preprocess(inp, target, inp_time, tgt_time)
    outs = []
    for i in range(Hz):
        h = jnp.zeros((B, HIDDEN), jnp.float32)
        for t in range(T):
            h = jnp.tanh(src[t] @ wih.T + bih + h @ whh.T + bhh)
        out = h @ wfc.T + bfc
        outs.append(out.reshape(B, NUM_NODES, OUTPUT_DIM))
        fb = jnp.concatenate([out.reshape(B, NUM_NODES, OUTPUT_DIM),
                              tgt[i, :, :, OUTPUT_DIM:]], axis=-1).reshape(B, INPUT_SIZE)
        src = jnp.concatenate([src[1:], fb[None]], axis=0)
    o = jnp.transpose(jnp.stack(outs), (1, 0, 2, 3))   # (B, Hz, N, O)
    return o[..., 0] if OUTPUT_DIM == 1 else o


if __name__ == "__main__":
    key = jax.random.PRNGKey(0)
    ks = jax.random.split(key, 10)

    # deterministic parameter init (PyTorch-default-style uniform(-1/sqrt(H), 1/sqrt(H)))
    k = 1.0 / np.sqrt(HIDDEN)
    wih = jax.random.uniform(ks[0], (HIDDEN, INPUT_SIZE), jnp.float32, -k, k)
    whh = jax.random.uniform(ks[1], (HIDDEN, HIDDEN), jnp.float32, -k, k)
    bih = jax.random.uniform(ks[2], (HIDDEN,), jnp.float32, -k, k)
    bhh = jax.random.uniform(ks[3], (HIDDEN,), jnp.float32, -k, k)
    wfc = jax.random.uniform(ks[4], (N_OUT, HIDDEN), jnp.float32, -k, k)
    bfc = jax.random.uniform(ks[5], (N_OUT,), jnp.float32, -k, k)
    params = (wih, whh, bih, bhh, wfc, bfc)

    # deterministic example inputs (module's raw forward() arguments)
    inp = jax.random.normal(ks[6], (BATCH, INPUT_WINDOW, NUM_NODES), jnp.float32)
    inp_time = jax.random.normal(ks[7], (BATCH, INPUT_WINDOW, 2), jnp.float32)
    target = jax.random.normal(ks[8], (BATCH, OUTPUT_WINDOW, NUM_NODES), jnp.float32)
    tgt_time = jax.random.normal(ks[9], (BATCH, OUTPUT_WINDOW, 2), jnp.float32)

    result = rnn_forward(inp, target, inp_time, tgt_time, params)
    jax.block_until_ready(result)

    ref = rnn_forward_ref(inp, target, inp_time, tgt_time, params)
    assert result.shape == (BATCH, OUTPUT_WINDOW, NUM_NODES), result.shape
    # Tight tolerance: all-f32 kernel; only weight-fusion reassociation differs.
    np.testing.assert_allclose(np.asarray(result), np.asarray(ref), rtol=1e-4, atol=1e-5)

    print("KERNEL_OK")
</pallas_src>

<mosaic_0001>
module attributes {stable_mosaic.version = 11 : i64} {
  func.func @rnn_forecast_kernel(%arg0: memref<8x6x32xf32, #tpu.memory_space<vmem>>, %arg1: memref<2x2x32xf32, #tpu.memory_space<vmem>>, %arg2: memref<32x32xf32, #tpu.memory_space<vmem>>, %arg3: memref<32x32xf32, #tpu.memory_space<vmem>>, %arg4: memref<32x7xf32, #tpu.memory_space<vmem>>, %arg5: memref<1x7xf32, #tpu.memory_space<vmem>>, %arg6: memref<6x7xf32, #tpu.memory_space<vmem>>) attributes {dimension_semantics = [], scalar_prefetch = 0 : i64, scratch_operands = 0 : i64, tpu.core_type = #tpu.core_type<tc>} {
    %c0 = arith.constant 0 : index
    %c0_0 = arith.constant 0 : index
    %0 = vector.load %arg2[%c0, %c0_0] : memref<32x32xf32, #tpu.memory_space<vmem>>, vector<32x32xf32>
    %c0_1 = arith.constant 0 : index
    %c0_2 = arith.constant 0 : index
    %1 = vector.load %arg3[%c0_1, %c0_2] : memref<32x32xf32, #tpu.memory_space<vmem>>, vector<32x32xf32>
    %c0_3 = arith.constant 0 : index
    %c0_4 = arith.constant 0 : index
    %2 = vector.load %arg4[%c0_3, %c0_4] : memref<32x7xf32, #tpu.memory_space<vmem>>, vector<32x7xf32>
    %c0_5 = arith.constant 0 : index
    %c0_6 = arith.constant 0 : index
    %3 = vector.load %arg5[%c0_5, %c0_6] : memref<1x7xf32, #tpu.memory_space<vmem>>, vector<1x7xf32>
    %c0_7 = arith.constant 0 : index
    %c0_8 = arith.constant 0 : index
    %c0_9 = arith.constant 0 : index
    %4 = vector.load %arg1[%c0_7, %c0_8, %c0_9] : memref<2x2x32xf32, #tpu.memory_space<vmem>>, vector<1x2x32xf32>
    %5 = vector.shape_cast %4 : vector<1x2x32xf32> to vector<2x32xf32>
    %c1 = arith.constant 1 : index
    %c0_10 = arith.constant 0 : index
    %c0_11 = arith.constant 0 : index
    %6 = vector.load %arg1[%c1, %c0_10, %c0_11] : memref<2x2x32xf32, #tpu.memory_space<vmem>>, vector<1x2x32xf32>
    %7 = vector.shape_cast %6 : vector<1x2x32xf32> to vector<2x32xf32>
    %c0_12 = arith.constant 0 : index
    %c0_13 = arith.constant 0 : index
    %c0_14 = arith.constant 0 : index
    %8 = vector.load %arg0[%c0_12, %c0_13, %c0_14] : memref<8x6x32xf32, #tpu.memory_space<vmem>>, vector<1x6x32xf32>
    %9 = vector.shape_cast %8 : vector<1x6x32xf32> to vector<6x32xf32>
    %c1_15 = arith.constant 1 : index
    %c0_16 = arith.constant 0 : index
    %c0_17 = arith.constant 0 : index
    %10 = vector.load %arg0[%c1_15, %c0_16, %c0_17] : memref<8x6x32xf32, #tpu.memory_space<vmem>>, vector<1x6x32xf32>
    %11 = vector.shape_cast %10 : vector<1x6x32xf32> to vector<6x32xf32>
    %c2 = arith.constant 2 : index
    %c0_18 = arith.constant 0 : index
    %c0_19 = arith.constant 0 : index
    %12 = vector.load %arg0[%c2, %c0_18, %c0_19] : memref<8x6x32xf32, #tpu.memory_space<vmem>>, vector<1x6x32xf32>
    %13 = vector.shape_cast %12 : vector<1x6x32xf32> to vector<6x32xf32>
    %c3 = arith.constant 3 : index
    %c0_20 = arith.constant 0 : index
    %c0_21 = arith.constant 0 : index
    %14 = vector.load %arg0[%c3, %c0_20, %c0_21] : memref<8x6x32xf32, #tpu.memory_space<vmem>>, vector<1x6x32xf32>
    %15 = vector.shape_cast %14 : vector<1x6x32xf32> to vector<6x32xf32>
    %c4 = arith.constant 4 : index
    %c0_22 = arith.constant 0 : index
    %c0_23 = arith.constant 0 : index
    %16 = vector.load %arg0[%c4, %c0_22, %c0_23] : memref<8x6x32xf32, #tpu.memory_space<vmem>>, vector<1x6x32xf32>
    %17 = vector.shape_cast %16 : vector<1x6x32xf32> to vector<6x32xf32>
    %c5 = arith.constant 5 : index
    %c0_24 = arith.constant 0 : index
    %c0_25 = arith.constant 0 : index
    %18 = vector.load %arg0[%c5, %c0_24, %c0_25] : memref<8x6x32xf32, #tpu.memory_space<vmem>>, vector<1x6x32xf32>
    %19 = vector.shape_cast %18 : vector<1x6x32xf32> to vector<6x32xf32>
    %c6 = arith.constant 6 : index
    %c0_26 = arith.constant 0 : index
    %c0_27 = arith.constant 0 : index
    %20 = vector.load %arg0[%c6, %c0_26, %c0_27] : memref<8x6x32xf32, #tpu.memory_space<vmem>>, vector<1x6x32xf32>
    %21 = vector.shape_cast %20 : vector<1x6x32xf32> to vector<6x32xf32>
    %c7 = arith.constant 7 : index
    %c0_28 = arith.constant 0 : index
    %c0_29 = arith.constant 0 : index
    %22 = vector.load %arg0[%c7, %c0_28, %c0_29] : memref<8x6x32xf32, #tpu.memory_space<vmem>>, vector<1x6x32xf32>
    %23 = vector.shape_cast %22 : vector<1x6x32xf32> to vector<6x32xf32>
    %24 = tpu.iota {dimensions = array<i32: 0>} : vector<6x32xi32>
    %25 = math.tanh %9 : vector<6x32xf32>
    %cst = arith.constant dense<0.000000e+00> : vector<6x32xf32>
    %26 = tpu.matmul %25, %0, %cst {dimension_numbers = #tpu.dot_dimension_numbers<[1], [0], [0], [1], [0, 0, 1, 1], [], []>} : vector<6x32xf32>, vector<32x32xf32>, vector<6x32xf32> -> vector<6x32xf32>
    %27 = arith.addf %26, %11 : vector<6x32xf32>
    %28 = math.tanh %27 : vector<6x32xf32>
    %cst_30 = arith.constant dense<0.000000e+00> : vector<6x32xf32>
    %29 = tpu.matmul %28, %0, %cst_30 {dimension_numbers = #tpu.dot_dimension_numbers<[1], [0], [0], [1], [0, 0, 1, 1], [], []>} : vector<6x32xf32>, vector<32x32xf32>, vector<6x32xf32> -> vector<6x32xf32>
    %30 = arith.addf %29, %13 : vector<6x32xf32>
    %31 = math.tanh %30 : vector<6x32xf32>
    %cst_31 = arith.constant dense<0.000000e+00> : vector<6x32xf32>
    %32 = tpu.matmul %31, %0, %cst_31 {dimension_numbers = #tpu.dot_dimension_numbers<[1], [0], [0], [1], [0, 0, 1, 1], [], []>} : vector<6x32xf32>, vector<32x32xf32>, vector<6x32xf32> -> vector<6x32xf32>
    %33 = arith.addf %32, %15 : vector<6x32xf32>
    %34 = math.tanh %33 : vector<6x32xf32>
    %cst_32 = arith.constant dense<0.000000e+00> : vector<6x32xf32>
    %35 = tpu.matmul %34, %0, %cst_32 {dimension_numbers = #tpu.dot_dimension_numbers<[1], [0], [0], [1], [0, 0, 1, 1], [], []>} : vector<6x32xf32>, vector<32x32xf32>, vector<6x32xf32> -> vector<6x32xf32>
    %36 = arith.addf %35, %17 : vector<6x32xf32>
    %37 = math.tanh %36 : vector<6x32xf32>
    %cst_33 = arith.constant dense<0.000000e+00> : vector<6x32xf32>
    %38 = tpu.matmul %37, %0, %cst_33 {dimension_numbers = #tpu.dot_dimension_numbers<[1], [0], [0], [1], [0, 0, 1, 1], [], []>} : vector<6x32xf32>, vector<32x32xf32>, vector<6x32xf32> -> vector<6x32xf32>
    %39 = arith.addf %38, %19 : vector<6x32xf32>
    %40 = math.tanh %39 : vector<6x32xf32>
    %cst_34 = arith.constant dense<0.000000e+00> : vector<6x32xf32>
    %41 = tpu.matmul %40, %0, %cst_34 {dimension_numbers = #tpu.dot_dimension_numbers<[1], [0], [0], [1], [0, 0, 1, 1], [], []>} : vector<6x32xf32>, vector<32x32xf32>, vector<6x32xf32> -> vector<6x32xf32>
    %42 = arith.addf %41, %21 : vector<6x32xf32>
    %43 = math.tanh %42 : vector<6x32xf32>
    %cst_35 = arith.constant dense<0.000000e+00> : vector<6x32xf32>
    %44 = tpu.matmul %43, %0, %cst_35 {dimension_numbers = #tpu.dot_dimension_numbers<[1], [0], [0], [1], [0, 0, 1, 1], [], []>} : vector<6x32xf32>, vector<32x32xf32>, vector<6x32xf32> -> vector<6x32xf32>
    %45 = arith.addf %44, %23 : vector<6x32xf32>
    %46 = math.tanh %45 : vector<6x32xf32>
    %47 = vector.extract_strided_slice %46 {offsets = [0, 0], sizes = [2, 32], strides = [1, 1]} : vector<6x32xf32> to vector<2x32xf32>
    %cst_36 = arith.constant dense<0.000000e+00> : vector<2x32xf32>
    %48 = tpu.matmul %47, %1, %cst_36 {dimension_numbers = #tpu.dot_dimension_numbers<[1], [0], [0], [1], [0, 0, 1, 1], [], []>} : vector<2x32xf32>, vector<32x32xf32>, vector<2x32xf32> -> vector<2x32xf32>
    %49 = arith.addf %48, %5 : vector<2x32xf32>
    %50 = tpu.concatenate %49, %49, %49 in 0 : vector<2x32xf32>, vector<2x32xf32>, vector<2x32xf32> -> vector<6x32xf32>
    %cst_37 = arith.constant dense<0.000000e+00> : vector<6x32xf32>
    %51 = tpu.matmul %46, %0, %cst_37 {dimension_numbers = #tpu.dot_dimension_numbers<[1], [0], [0], [1], [0, 0, 1, 1], [], []>} : vector<6x32xf32>, vector<32x32xf32>, vector<6x32xf32> -> vector<6x32xf32>
    %52 = arith.addf %51, %50 : vector<6x32xf32>
    %53 = math.tanh %52 : vector<6x32xf32>
    %c2_i32 = arith.constant 2 : i32
    %54 = vector.broadcast %c2_i32 : i32 to vector<6x32xi32>
    %55 = arith.cmpi sge, %24, %54 : vector<6x32xi32>
    %56 = arith.select %55, %53, %46 : vector<6x32xi1>, vector<6x32xf32>
    %57 = vector.extract_strided_slice %56 {offsets = [2, 0], sizes = [2, 32], strides = [1, 1]} : vector<6x32xf32> to vector<2x32xf32>
    %cst_38 = arith.constant dense<0.000000e+00> : vector<2x32xf32>
    %58 = tpu.matmul %57, %1, %cst_38 {dimension_numbers = #tpu.dot_dimension_numbers<[1], [0], [0], [1], [0, 0, 1, 1], [], []>} : vector<2x32xf32>, vector<32x32xf32>, vector<2x32xf32> -> vector<2x32xf32>
    %59 = arith.addf %58, %7 : vector<2x32xf32>
    %60 = tpu.concatenate %59, %59, %59 in 0 : vector<2x32xf32>, vector<2x32xf32>, vector<2x32xf32> -> vector<6x32xf32>
    %cst_39 = arith.constant dense<0.000000e+00> : vector<6x32xf32>
    %61 = tpu.matmul %56, %0, %cst_39 {dimension_numbers = #tpu.dot_dimension_numbers<[1], [0], [0], [1], [0, 0, 1, 1], [], []>} : vector<6x32xf32>, vector<32x32xf32>, vector<6x32xf32> -> vector<6x32xf32>
    %62 = arith.addf %61, %60 : vector<6x32xf32>
    %63 = math.tanh %62 : vector<6x32xf32>
    %c4_i32 = arith.constant 4 : i32
    %64 = vector.broadcast %c4_i32 : i32 to vector<6x32xi32>
    %65 = arith.cmpi sge, %24, %64 : vector<6x32xi32>
    %66 = arith.select %65, %63, %56 : vector<6x32xi1>, vector<6x32xf32>
    %cst_40 = arith.constant dense<0.000000e+00> : vector<6x7xf32>
    %67 = tpu.matmul %66, %2, %cst_40 {dimension_numbers = #tpu.dot_dimension_numbers<[1], [0], [0], [1], [0, 0, 1, 1], [], []>} : vector<6x32xf32>, vector<32x7xf32>, vector<6x7xf32> -> vector<6x7xf32>
    %68 = vector.broadcast %3 : vector<1x7xf32> to vector<6x7xf32>
    %69 = arith.addf %67, %68 : vector<6x7xf32>
    %c0_41 = arith.constant 0 : index
    %c0_42 = arith.constant 0 : index
    %70 = vector.load %arg6[%c0_41, %c0_42] : memref<6x7xf32, #tpu.memory_space<vmem>>, vector<6x7xf32>
    tpu.vector_store %arg6[%c0_41, %c0_42], %69 {strides = array<i32>} : memref<6x7xf32, #tpu.memory_space<vmem>>, vector<6x7xf32>,
    return
  }
}

</mosaic_0001>

<bundles_post_ra>
// kernel: tpu_custom_call.1
= control target key start
LH: loop header
LB: loop body
LE: loop exit
PB: predicated region body
PF: predicated region fallthrough
CT: control target
= control target key end

     0   :  { %s574_s0 = inlined_call_operand.vmem [shape: f32[8,6,32], index: 0, kind: input, shape index: {}]   ;;  %s575_s1 = inlined_call_operand.vmem [shape: f32[2,2,32], index: 1, kind: input, shape index: {}]   ;;  %s576_s2 = inlined_call_operand.vmem [shape: f32[32,32], index: 2, kind: input, shape index: {}]   ;;  %s577_s3 = inlined_call_operand.vmem [shape: f32[32,32], index: 3, kind: input, shape index: {}]   ;;  %s578_s4 = inlined_call_operand.vmem [shape: f32[32,7], index: 4, kind: input, shape index: {}]   ;;  %s579_s5 = inlined_call_operand.vmem [shape: f32[1,7], index: 5, kind: input, shape index: {}]   ;;  %s580_s6 = inlined_call_operand.hbm [shape: f32[6,7], index: 6, kind: output, shape index: {}]  }
   0x1   :  { %v27_v0 = vld [vmem:[%s576_s2 + $0x18] sm:$0xff]  ;;  %v26_v1 = vld [vmem:[%s576_s2 + $0x10] sm:$0xff]  ;;  %v40_v2 = vld [vmem:[%s574_s0] sm:$0x3f] }
   0x2   :  { %74 = vmatpush.msra.mxu0 %v27_v0  ;;  %98 = vmatpush.msra.mxu1 %v27_v0  ;;  %v25_v3 = vld [vmem:[%s576_s2 + $0x8] sm:$0xff]  ;;  %404 = vtanh.f32 %v40_v2 }
   0x3   :  { %122 = vmatpush.msra.mxu2 %v27_v0  ;;  %146 = vmatpush.msra.mxu3 %v27_v0 }
   0x4   :  { %11 = vsyncpa [#allocation3], 0  ;;  %75 = vmatpush.msra.mxu0 %v26_v1  ;;  %99 = vmatpush.msra.mxu1 %v26_v1  ;;  %v24_v4 = vld [vmem:[%s576_s2] sm:$0xff]  ;;  %vm58_vm0 = vcmask 261120   ;;  %v383_v6 = vld [vmem:[%s574_s0 + $0x8] sm:$0x3f]  ;;  %v55_v44 = vlaneseq }
   0x5   :  { %123 = vmatpush.msra.mxu2 %v26_v1  ;;  %147 = vmatpush.msra.mxu3 %v26_v1  ;;  %v384_v10 = vld [vmem:[%s574_s0 + $0x10] sm:$0x3f]  ;;  %v385_v14 = vld [vmem:[%s574_s0 + $0x18] sm:$0x3f]  ;;  %v386_v18 = vld [vmem:[%s574_s0 + $0x20] sm:$0x3f] }
   0x6   :  { %76 = vmatpush.msra.mxu0 %v25_v3  ;;  %100 = vmatpush.msra.mxu1 %v25_v3  ;;  %v387_v22 = vld [vmem:[%s574_s0 + $0x28] sm:$0x3f]  ;;  %v388_v26 = vld [vmem:[%s574_s0 + $0x30] sm:$0x3f]  ;;  %v31_v30 = vld [vmem:[%s577_s3 + $0x18] sm:$0xff]  ;;  %vm255_vm1 = vcmask 1041408  }
   0x7   :  { %124 = vmatpush.msra.mxu2 %v25_v3  ;;  %148 = vmatpush.msra.mxu3 %v25_v3  ;;  %v30_v31 = vld [vmem:[%s577_s3 + $0x10] sm:$0xff]  ;;  %v29_v32 = vld [vmem:[%s577_s3 + $0x8] sm:$0xff]  ;;  %v28_v33 = vld [vmem:[%s577_s3] sm:$0xff]  ;;  %vm257_vm2 = vcmask 1043456   ;;  %v56_v48 = vshrl.u32 %v55_v44, 7  ;;  %s373_s17 = sshll.u32 %s580_s6, 4  ;;  %s374_s17 = int_to_ptr.hbm [resolvable:$true] %s373_s17 }
   0x8   :  { %77 = vmatpush.msra.mxu0 %v24_v4  ;;  %101 = vmatpush.msra.mxu1 %v24_v4  ;;  %v405_v5 = vpop.eup %404  ;;  %v389_v34 = vld [vmem:[%s574_s0 + $0x38] sm:$0x3f]  ;;  %v37_v38 = vld [vmem:[%s575_s1] sm:$0x3]  ;;  %v34_v53 = vld [vmem:[%s578_s4 + $0x10] sm:$0xff]  ;;  %vm364_vm5 = vcmask 54272  }
   0x9   :  { %125 = vmatpush.msra.mxu2 %v24_v4  ;;  %149 = vmatpush.msra.mxu3 %v24_v4  ;;  %vm280_vm3 = vcmp.ge.s32.totalorder %v56_v48, 2  ;;  %v35_v52 = vld [vmem:[%s578_s4 + $0x18] sm:$0xff]  ;;  %v33_v54 = vld [vmem:[%s578_s4 + $0x8] sm:$0xff]  ;;  %v32_v55 = vld [vmem:[%s578_s4] sm:$0xff]  ;;  %vm336_vm4 = vcmp.ge.s32.totalorder %v56_v48, 4 }
   0xa   :  { %390 = vmatmul.msk.f32.vlgmr.msra.gmra.mxu0 %vm58_vm0, %v405_v5  ;;  %194 = vmatpush.msrb.mxu1 %v27_v0  ;;  %v382_v56 = vld [vmem:[%s575_s1 + $0x2] sm:$0x3]  ;;  %s450_s1 = smov [#allocation2]  }
   0xb   :  { %170 = vmatpush.msrb.mxu0 %v27_v0  ;;  %218 = vmatpush.msrb.mxu2 %v27_v0  ;;  %s371_s14 = sshll.u32 %s450_s1, 4  ;;  %s372_s14 = int_to_ptr.vmem [resolvable:$true] %s371_s14 }
   0xc   :  { %195 = vmatpush.msrb.mxu1 %v26_v1  ;;  %242 = vmatpush.msrb.mxu3 %v31_v30 }
   0xd   :  { %171 = vmatpush.msrb.mxu0 %v26_v1  ;;  %219 = vmatpush.msrb.mxu2 %v26_v1 }
   0xe   :  { %196 = vmatpush.msrb.mxu1 %v25_v3  ;;  %243 = vmatpush.msrb.mxu3 %v30_v31 }
   0xf   :  { %172 = vmatpush.msrb.mxu0 %v25_v3  ;;  %220 = vmatpush.msrb.mxu2 %v25_v3 }
  0x10   :  { %197 = vmatpush.msrb.mxu1 %v24_v4  ;;  %244 = vmatpush.msrb.mxu3 %v29_v32 }
  0x11   :  { %173 = vmatpush.msrb.mxu0 %v24_v4  ;;  %221 = vmatpush.msrb.mxu2 %v24_v4 }
  0x12   :  { %245 = vmatpush.msrb.mxu3 %v28_v33 }
  0x13   :  { %271 = vmatpush.msra.mxu0 %v27_v0 }
  0x15   :  { %272 = vmatpush.msra.mxu0 %v26_v1 }
  0x17   :  { %273 = vmatpush.msra.mxu0 %v25_v3 }
  0x19   :  { %274 = vmatpush.msra.mxu0 %v24_v4 }
  0x87   :  { %v79_v7 = vpop.f32.mrf.mxu0 }
  0x88   :  { %v80_v8 = vadd.f32 %v383_v6, %v79_v7 }
  0x8a   :  { %406 = vtanh.f32 %v80_v8 }
  0x90   :  { %v407_v9 = vpop.eup %406 }
  0x91   :  { %391 = vmatmul.msk.f32.vlgmr.msra.gmra.mxu1 %vm58_vm0, %v407_v9 }
  0x92   :  { %298 = vmatpush.msra.mxu1 %v31_v30 }
  0x94   :  { %299 = vmatpush.msra.mxu1 %v30_v31 }
  0x96   :  { %300 = vmatpush.msra.mxu1 %v29_v32 }
  0x98   :  { %301 = vmatpush.msra.mxu1 %v28_v33 }
 0x10e   :  { %v103_v11 = vpop.f32.mrf.mxu1 }
 0x10f   :  { %v104_v12 = vadd.f32 %v384_v10, %v103_v11 }
 0x111   :  { %408 = vtanh.f32 %v104_v12 }
 0x117   :  { %v409_v13 = vpop.eup %408 }
 0x118   :  { %392 = vmatmul.msk.f32.vlgmr.msra.gmra.mxu2 %vm58_vm0, %v409_v13 }
 0x119   :  { %327 = vmatpush.msra.mxu2 %v27_v0 }
 0x11b   :  { %328 = vmatpush.msra.mxu2 %v26_v1 }
 0x11d   :  { %329 = vmatpush.msra.mxu2 %v25_v3  ;;  %v403_v3 = vld [vmem:[%s579_s5] ss:$0 sm:$0xff] }
 0x11f   :  { %330 = vmatpush.msra.mxu2 %v24_v4 }
 0x19b   :  { %v127_v15 = vpop.f32.mrf.mxu2 }
 0x19c   :  { %v128_v16 = vadd.f32 %v385_v14, %v127_v15 }
 0x19e   :  { %410 = vtanh.f32 %v128_v16 }
 0x1a4   :  { %v411_v17 = vpop.eup %410 }
 0x1a5   :  { %393 = vmatmul.msk.f32.vlgmr.msra.gmra.mxu3 %vm58_vm0, %v411_v17 }
 0x1a6   :  { %356 = vmatpush.msra.mxu3 %v35_v52 }
 0x1a8   :  { %357 = vmatpush.msra.mxu3 %v34_v53 }
 0x1aa   :  { %358 = vmatpush.msra.mxu3 %v33_v54 }
 0x1ac   :  { %359 = vmatpush.msra.mxu3 %v32_v55 }
 0x228   :  { %v151_v19 = vpop.f32.mrf.mxu3 }
 0x229   :  { %v152_v20 = vadd.f32 %v386_v18, %v151_v19 }
 0x22b   :  { %412 = vtanh.f32 %v152_v20 }
 0x231   :  { %v413_v21 = vpop.eup %412 }
 0x232   :  { %394 = vmatmul.msk.f32.vlgmr.msrb.gmra.mxu0 %vm58_vm0, %v413_v21 }
 0x2af   :  { %v175_v23 = vpop.f32.mrf.mxu0 }
 0x2b0   :  { %v176_v24 = vadd.f32 %v387_v22, %v175_v23 }
 0x2b2   :  { %414 = vtanh.f32 %v176_v24 }
 0x2b8   :  { %v415_v25 = vpop.eup %414 }
 0x2b9   :  { %395 = vmatmul.msk.f32.vlgmr.msrb.gmra.mxu1 %vm58_vm0, %v415_v25 }
 0x336   :  { %v199_v27 = vpop.f32.mrf.mxu1 }
 0x337   :  { %v200_v28 = vadd.f32 %v388_v26, %v199_v27 }
 0x339   :  { %416 = vtanh.f32 %v200_v28 }
 0x33f   :  { %v417_v29 = vpop.eup %416 }
 0x340   :  { %396 = vmatmul.msk.f32.vlgmr.msrb.gmra.mxu2 %vm58_vm0, %v417_v29 }
 0x3c3   :  { %v223_v35 = vpop.f32.mrf.mxu2 }
 0x3c4   :  { %v224_v36 = vadd.f32 %v389_v34, %v223_v35 }
 0x3c6   :  { %418 = vtanh.f32 %v224_v36 }
 0x3cc   :  { %v419_v37 = vpop.eup %418 }
 0x3cd   :  { %397 = vmatmul.msk.f32.vlgmr.msrb.gmra.mxu3 %vm58_vm0, %v419_v37  ;;  %398 = vmatmul.msk.f32.vlgmr.msra.gmra.mxu0 %vm58_vm0, %v419_v37 }
 0x44a   :  { %v276_v45 = vpop.f32.mrf.mxu0 }
 0x450   :  { %v247_v39 = vpop.f32.mrf.mxu3 }
 0x451   :  { %v248_v40 = vadd.f32 %v247_v39, %v37_v38 }
 0x453   :  { %v251_v41 = vrot.slane %v248_v40, 6  ;;  %v253_v42 = vrot.slane %v248_v40, 4 }
 0x455   :  { %v256_v43 = vsel %vm255_vm1, %v248_v40, %v251_v41 }
 0x456   :  { %v258_v46 = vsel %vm257_vm2, %v256_v43, %v253_v42 }
 0x457   :  { %v277_v47 = vadd.f32 %v276_v45, %v258_v46 }
 0x459   :  { %420 = vtanh.f32 %v277_v47 }
 0x45f   :  { %v421_v49 = vpop.eup %420 }
 0x460   :  { %v281_v50 = vsel %vm280_vm3, %v421_v49, %v419_v37 }
 0x461   :  { %v283_v51 = vrot.slane %v281_v50, 2  ;;  %400 = vmatmul.msk.f32.vlgmr.msra.gmra.mxu2 %vm58_vm0, %v281_v50 }
 0x463   :  { %399 = vmatmul.msk.f32.vlgmr.msra.gmra.mxu1 %vm58_vm0, %v283_v51 }
 0x4e0   :  { %v303_v57 = vpop.f32.mrf.mxu1 }
 0x4e1   :  { %v304_v58 = vadd.f32 %v382_v56, %v303_v57 }
 0x4e3   :  { %v307_v59 = vrot.slane %v304_v58, 6  ;;  %v309_v60 = vrot.slane %v304_v58, 4 }
 0x4e4   :  { %v332_v63 = vpop.f32.mrf.mxu2 }
 0x4e5   :  { %v311_v61 = vsel %vm255_vm1, %v304_v58, %v307_v59 }
 0x4e6   :  { %v312_v62 = vsel %vm257_vm2, %v311_v61, %v309_v60 }
 0x4e7   :  { %v333_v0 = vadd.f32 %v332_v63, %v312_v62 }
 0x4e9   :  { %422 = vtanh.f32 %v333_v0 }
 0x4ef   :  { %v423_v1 = vpop.eup %422 }
 0x4f0   :  { %v337_v2 = vsel %vm336_vm4, %v423_v1, %v281_v50 }
 0x4f1   :  { %401 = vmatmul.msk.f32.vlgmr.msra.gmra.mxu3 %vm58_vm0, %v337_v2 }
 0x574   :  { %v361_v4 = vpop.f32.mrf.mxu3 }
 0x575   :  { %v362_v5 = vadd.f32 %v403_v3, %v361_v4 }
 0x577   :  { %365 = vst.msk [vmem:[#allocation2] sm:$0x3f] %vm364_vm5, %v362_v5 }
 0x578   :  { %376 = dma.vmem_to_hbm [thread:$0]  %s372_s14, 128, %s374_s17, [#allocation3]  }
 0x579   :  { %448 = dma.done.wait [#allocation3], 128  }
 0x57a   :  { %449 = vsyncadd [#allocation3], 4294967168 }
 0x57b   :  { %381 = vsyncpa [#allocation3], 1 }

</bundles_post_ra>
